<compile_context>
chip_gen: v7x
topology: tpu7x:2x2x1
jax: 0.10.0
libtpu: 0.0.40
codegen_flags: <defaults>
</compile_context>

<pallas_src>
import functools

import jax
import jax.numpy as jnp
import numpy as np
from jax.experimental import pallas as pl
from jax.experimental.pallas import tpu as pltpu


def channel_attention_kernel(x_ref, w1t_ref, b1_ref, w2t_ref, b2_ref, o_ref, *, hw):
    """One grid step: (NB, C, HW) slab -> pooled stats -> fused MLP -> gate * x."""
    x = x_ref[...]                                   # (NB, C, HW), input dtype
    nb = x.shape[0]

    xf = x.astype(jnp.float32)                       # f32 accumulation (no-op for f32 inputs)

    # ---- spatial pooling (reduction over the lane axis) ----
    avg = jnp.sum(xf, axis=2) * (1.0 / hw)           # (NB, C) == AdaptiveAvgPool2d(1)
    mx = jnp.max(xf, axis=2)                         # (NB, C) == AdaptiveMaxPool2d(1)

    # ---- fused shared MLP: one fc1/ReLU/fc2 pass over both pooled stats ----
    pooled = jnp.concatenate([avg, mx], axis=0)      # (2*NB, C)
    h = jnp.dot(pooled, w1t_ref[...],
                preferred_element_type=jnp.float32) + b1_ref[...]    # (2*NB, Crp)
    h = jnp.maximum(h, 0.0)                                          # ReLU
    z2 = jnp.dot(h, w2t_ref[...],
                 preferred_element_type=jnp.float32) + b2_ref[...]   # (2*NB, C)
    z = z2[:nb] + z2[nb:]                            # avg_out + max_out, (NB, C)

    gate = jax.nn.sigmoid(z)                         # exp/recip on the EUP slot
    o_ref[...] = (gate[:, :, None] * x).astype(o_ref.dtype)


def _largest_divisor_leq(n, cap):
    cap = max(1, min(n, cap))
    for d in range(cap, 0, -1):
        if n % d == 0:
            return d
    return 1


def _physical_vmem_bytes():
    try:
        return int(pltpu.get_tpu_info().vmem_capacity_bytes)
    except Exception:
        return 64 * 1024 * 1024  # conservative: v7x per-TensorCore VMEM


def _pick_nb(n, per_n_bytes, budget_bytes, *, target_steps=8, min_slab_bytes=2 << 20):
    """Images per grid step: fit the VMEM budget (double-buffered in+out),
    prefer >= target_steps grid steps (>=4 per v7x TC), keep slabs >= ~2 MiB."""
    nb_cap = max(1, min(n, int(budget_bytes // max(4 * per_n_bytes, 1))))
    nb_min_slab = max(1, -(-min_slab_bytes // max(per_n_bytes, 1)))  # slab >= ~2 MiB
    nb_for_steps = max(1, n // target_steps)                          # leaves >= target_steps steps
    desired = min(nb_cap, max(nb_min_slab, nb_for_steps))
    return _largest_divisor_leq(n, desired)


def channel_attention(x, w1, b1, w2, b2, *, vmem_budget_bytes=40 * 1024 * 1024):
    """x: (N, C, H, W). Returns sigmoid(fc2(relu(fc1(avg))) + fc2(relu(fc1(max)))) * x."""
    N, C, H, W = x.shape
    HW = H * W
    Cr = w1.shape[0]
    assert w1.shape == (Cr, C) and w2.shape == (C, Cr)

    itemsize = x.dtype.itemsize
    x_flat = x.reshape(N, C, HW)                     # no pad: last block dim == full dim

    per_n_bytes = C * HW * itemsize
    NB = _pick_nb(N, per_n_bytes, vmem_budget_bytes)
    grid = (N // NB,)
    # TODO(synk): if a single image slab (4*C*HW*itemsize) exceeds the per-core VMEM
    # budget, switch to a two-pass scheme (tiled pooling pass + separate scale pass).

    # Pad the tiny hidden dim up to a multiple of 8 (>= 8) with zero weights/bias:
    # exact, and avoids degenerate (Cr=2)-wide matmul shapes on the MXU.
    Crp = max(8, ((Cr + 7) // 8) * 8)
    w1t = jnp.asarray(w1, jnp.float32).T             # (C, Cr)
    w2t = jnp.asarray(w2, jnp.float32).T             # (Cr, C)
    b1r = jnp.asarray(b1, jnp.float32).reshape(1, Cr)
    if Crp != Cr:
        w1t = jnp.pad(w1t, ((0, 0), (0, Crp - Cr)))
        w2t = jnp.pad(w2t, ((0, Crp - Cr), (0, 0)))
        b1r = jnp.pad(b1r, ((0, 0), (0, Crp - Cr)))
    b2r = jnp.asarray(b2, jnp.float32).reshape(1, C)

    slab_bytes = NB * C * HW * itemsize
    weight_bytes = 4 * (w1t.size + w2t.size + b1r.size + b2r.size)
    needed = 4 * slab_bytes + 2 * weight_bytes + (2 << 20)
    vmem_limit = int(min(max(needed, 16 * 1024 * 1024),
                         int(0.9 * _physical_vmem_bytes())))

    cost = pl.CostEstimate(
        flops=int(3 * N * C * HW + 8 * N * C * Crp),
        transcendentals=int(N * C),
        bytes_accessed=int(2 * N * C * HW * itemsize + weight_bytes),
    )

    kernel = functools.partial(channel_attention_kernel, hw=HW)

    out_flat = pl.pallas_call(
        kernel,
        out_shape=jax.ShapeDtypeStruct((N, C, HW), x.dtype),
        grid_spec=pltpu.PrefetchScalarGridSpec(
            num_scalar_prefetch=0,
            grid=grid,
            in_specs=[
                pl.BlockSpec((NB, C, HW), lambda n: (n, 0, 0)),   # x slab (full C, HW extents)
                pl.BlockSpec((C, Crp), lambda n: (0, 0)),         # w1^T (resident)
                pl.BlockSpec((1, Crp), lambda n: (0, 0)),         # b1
                pl.BlockSpec((Crp, C), lambda n: (0, 0)),         # w2^T (resident)
                pl.BlockSpec((1, C), lambda n: (0, 0)),           # b2
            ],
            out_specs=pl.BlockSpec((NB, C, HW), lambda n: (n, 0, 0)),
        ),
        compiler_params=pltpu.CompilerParams(
            dimension_semantics=("parallel",),
            vmem_limit_bytes=vmem_limit,
        ),
        cost_estimate=cost,
    )(x_flat, w1t, b1r, w2t, b2r)

    return out_flat.reshape(N, C, H, W)


def reference(x, w1, b1, w2, b2):
    # Pure-JAX reference of the PyTorch forward.
    xf = x.astype(jnp.float32)
    avg = jnp.mean(xf, axis=(2, 3), keepdims=True)   # (N, C, 1, 1)
    mx = jnp.max(xf, axis=(2, 3), keepdims=True)

    def mlp(p):  # p: (N, C, 1, 1)
        p = p[:, :, 0, 0]                                    # (N, C)
        h = jnp.maximum(p @ w1.T + b1[None, :], 0.0)         # (N, Cr)
        o = h @ w2.T + b2[None, :]                           # (N, C)
        return o[:, :, None, None]

    gate = jax.nn.sigmoid(mlp(avg) + mlp(mx))
    return (gate * xf).astype(x.dtype)


if __name__ == "__main__":
    # Small shapes consistent with the module: reduction_ratio=16 needs C >= 16.
    N, C, H, W = 2, 32, 8, 8
    reduction_ratio = 16
    Cr = C // reduction_ratio                               # hidden = 2

    key = jax.random.PRNGKey(0)
    kx, k1, k2, k3, k4 = jax.random.split(key, 5)

    x = jax.random.normal(kx, (N, C, H, W), dtype=jnp.float32)

    # Conv2d(k=1)-style init: U(-1/sqrt(fan_in), 1/sqrt(fan_in)).
    bound1 = 1.0 / np.sqrt(C)
    w1 = jax.random.uniform(k1, (Cr, C), jnp.float32, -bound1, bound1)   # fc1.weight (Cr,C,1,1)->(Cr,C)
    b1 = jax.random.uniform(k2, (Cr,), jnp.float32, -bound1, bound1)
    bound2 = 1.0 / np.sqrt(Cr)
    w2 = jax.random.uniform(k3, (C, Cr), jnp.float32, -bound2, bound2)   # fc2.weight (C,Cr,1,1)->(C,Cr)
    b2 = jax.random.uniform(k4, (C,), jnp.float32, -bound2, bound2)

    out = channel_attention(x, w1, b1, w2, b2)
    out = jax.block_until_ready(out)

    ref = reference(x, w1, b1, w2, b2)
    assert out.shape == (N, C, H, W)
    np.testing.assert_allclose(np.asarray(out), np.asarray(ref), rtol=1e-5, atol=1e-5)

    print("KERNEL_OK")
</pallas_src>

<mosaic_0001>
module attributes {stable_mosaic.version = 11 : i64} {
  func.func @channel_attention_kernel(%arg0: i32, %arg1: memref<2x32x64xf32, #tpu.memory_space<vmem>>, %arg2: memref<32x8xf32, #tpu.memory_space<vmem>>, %arg3: memref<1x8xf32, #tpu.memory_space<vmem>>, %arg4: memref<8x32xf32, #tpu.memory_space<vmem>>, %arg5: memref<1x32xf32, #tpu.memory_space<vmem>>, %arg6: memref<2x32x64xf32, #tpu.memory_space<vmem>>) attributes {dimension_semantics = [#tpu.dimension_semantics<parallel>], iteration_bounds = array<i64: 1>, scalar_prefetch = 0 : i64, scratch_operands = 0 : i64, tpu.core_type = #tpu.core_type<tc>, window_params = [{transform_indices = @transform_0, window_bounds = array<i64: 2, 32, 64>}, {pipeline_mode = #tpu.pipeline_mode<synchronous>, transform_indices = @transform_1, window_bounds = array<i64: 32, 8>}, {pipeline_mode = #tpu.pipeline_mode<synchronous>, transform_indices = @transform_2, window_bounds = array<i64: 1, 8>}, {pipeline_mode = #tpu.pipeline_mode<synchronous>, transform_indices = @transform_3, window_bounds = array<i64: 8, 32>}, {pipeline_mode = #tpu.pipeline_mode<synchronous>, transform_indices = @transform_4, window_bounds = array<i64: 1, 32>}, {transform_indices = @transform_5, window_bounds = array<i64: 2, 32, 64>}]} {
    %c0 = arith.constant 0 : index
    %c0_0 = arith.constant 0 : index
    %c0_1 = arith.constant 0 : index
    %0 = vector.load %arg1[%c0, %c0_0, %c0_1] : memref<2x32x64xf32, #tpu.memory_space<vmem>>, vector<2x32x64xf32>
    %cst = arith.constant dense<0.000000e+00> : vector<2x32xf32>
    %1 = vector.multi_reduction <add>, %0, %cst [2] : vector<2x32x64xf32> to vector<2x32xf32>
    %cst_2 = arith.constant 1.562500e-02 : f32
    %2 = vector.broadcast %cst_2 : f32 to vector<2x32xf32>
    %3 = arith.mulf %1, %2 : vector<2x32xf32>
    %cst_3 = arith.constant dense<0xFF800000> : vector<2x32xf32>
    %4 = vector.multi_reduction <maximumf>, %0, %cst_3 [2] : vector<2x32x64xf32> to vector<2x32xf32>
    %5 = tpu.concatenate %3, %4 in 0 : vector<2x32xf32>, vector<2x32xf32> -> vector<4x32xf32>
    %c0_4 = arith.constant 0 : index
    %c0_5 = arith.constant 0 : index
    %6 = vector.load %arg2[%c0_4, %c0_5] : memref<32x8xf32, #tpu.memory_space<vmem>>, vector<32x8xf32>
    %cst_6 = arith.constant dense<0.000000e+00> : vector<4x8xf32>
    %7 = tpu.matmul %5, %6, %cst_6 {dimension_numbers = #tpu.dot_dimension_numbers<[1], [0], [0], [1], [0, 0, 1, 1], [], []>} : vector<4x32xf32>, vector<32x8xf32>, vector<4x8xf32> -> vector<4x8xf32>
    %c0_7 = arith.constant 0 : index
    %c0_8 = arith.constant 0 : index
    %8 = vector.load %arg3[%c0_7, %c0_8] : memref<1x8xf32, #tpu.memory_space<vmem>>, vector<1x8xf32>
    %9 = vector.broadcast %8 : vector<1x8xf32> to vector<4x8xf32>
    %10 = arith.addf %7, %9 : vector<4x8xf32>
    %cst_9 = arith.constant 0.000000e+00 : f32
    %11 = vector.broadcast %cst_9 : f32 to vector<4x8xf32>
    %12 = arith.maximumf %10, %11 : vector<4x8xf32>
    %c0_10 = arith.constant 0 : index
    %c0_11 = arith.constant 0 : index
    %13 = vector.load %arg4[%c0_10, %c0_11] : memref<8x32xf32, #tpu.memory_space<vmem>>, vector<8x32xf32>
    %cst_12 = arith.constant dense<0.000000e+00> : vector<4x32xf32>
    %14 = tpu.matmul %12, %13, %cst_12 {dimension_numbers = #tpu.dot_dimension_numbers<[1], [0], [0], [1], [0, 0, 1, 1], [], []>} : vector<4x8xf32>, vector<8x32xf32>, vector<4x32xf32> -> vector<4x32xf32>
    %c0_13 = arith.constant 0 : index
    %c0_14 = arith.constant 0 : index
    %15 = vector.load %arg5[%c0_13, %c0_14] : memref<1x32xf32, #tpu.memory_space<vmem>>, vector<1x32xf32>
    %16 = vector.broadcast %15 : vector<1x32xf32> to vector<4x32xf32>
    %17 = arith.addf %14, %16 : vector<4x32xf32>
    %18 = vector.extract_strided_slice %17 {offsets = [0, 0], sizes = [2, 32], strides = [1, 1]} : vector<4x32xf32> to vector<2x32xf32>
    %19 = vector.extract_strided_slice %17 {offsets = [2, 0], sizes = [2, 32], strides = [1, 1]} : vector<4x32xf32> to vector<2x32xf32>
    %20 = arith.addf %18, %19 : vector<2x32xf32>
    %21 = arith.negf %20 : vector<2x32xf32>
    %22 = math.exp %21 : vector<2x32xf32>
    %cst_15 = arith.constant 1.000000e+00 : f32
    %23 = vector.broadcast %cst_15 : f32 to vector<2x32xf32>
    %24 = arith.addf %23, %22 : vector<2x32xf32>
    %25 = arith.divf %23, %24 : vector<2x32xf32>
    %26 = vector.shape_cast %25 : vector<2x32xf32> to vector<2x32x1xf32>
    %27 = vector.broadcast %26 : vector<2x32x1xf32> to vector<2x32x64xf32>
    %28 = arith.mulf %27, %0 : vector<2x32x64xf32>
    %c0_16 = arith.constant 0 : index
    %c0_17 = arith.constant 0 : index
    %c0_18 = arith.constant 0 : index
    %29 = vector.load %arg6[%c0_16, %c0_17, %c0_18] : memref<2x32x64xf32, #tpu.memory_space<vmem>>, vector<2x32x64xf32>
    tpu.vector_store %arg6[%c0_16, %c0_17, %c0_18], %28 {strides = array<i32>} : memref<2x32x64xf32, #tpu.memory_space<vmem>>, vector<2x32x64xf32>,
    return
  }
  func.func @transform_0(%arg0: i32) -> (i32, i32, i32) {
    %c0_i32 = arith.constant 0 : i32
    %c0_i32_0 = arith.constant 0 : i32
    %c0_i32_1 = arith.constant 0 : i32
    return %arg0, %c0_i32, %c0_i32_0 : i32, i32, i32
  }
  func.func @transform_1(%arg0: i32) -> (i32, i32) {
    %c0_i32 = arith.constant 0 : i32
    %c0_i32_0 = arith.constant 0 : i32
    %c0_i32_1 = arith.constant 0 : i32
    return %c0_i32, %c0_i32_0 : i32, i32
  }
  func.func @transform_2(%arg0: i32) -> (i32, i32) {
    %c0_i32 = arith.constant 0 : i32
    %c0_i32_0 = arith.constant 0 : i32
    %c0_i32_1 = arith.constant 0 : i32
    return %c0_i32, %c0_i32_0 : i32, i32
  }
  func.func @transform_3(%arg0: i32) -> (i32, i32) {
    %c0_i32 = arith.constant 0 : i32
    %c0_i32_0 = arith.constant 0 : i32
    %c0_i32_1 = arith.constant 0 : i32
    return %c0_i32, %c0_i32_0 : i32, i32
  }
  func.func @transform_4(%arg0: i32) -> (i32, i32) {
    %c0_i32 = arith.constant 0 : i32
    %c0_i32_0 = arith.constant 0 : i32
    %c0_i32_1 = arith.constant 0 : i32
    return %c0_i32, %c0_i32_0 : i32, i32
  }
  func.func @transform_5(%arg0: i32) -> (i32, i32, i32) {
    %c0_i32 = arith.constant 0 : i32
    %c0_i32_0 = arith.constant 0 : i32
    %c0_i32_1 = arith.constant 0 : i32
    return %arg0, %c0_i32, %c0_i32_0 : i32, i32, i32
  }
}

</mosaic_0001>

<bundles_post_ra>
// kernel: tpu_custom_call.1
= control target key start
LH: loop header
LB: loop body
LE: loop exit
PB: predicated region body
PF: predicated region fallthrough
CT: control target
= control target key end

     0   :  { %10 = vsyncpa [#allocation3], 0  ;;  %s722_s0 = inlined_call_operand.hbm [shape: f32[2,32,64], index: 0, kind: input, shape index: {}]   ;;  %s723_s1 = inlined_call_operand.vmem [shape: f32[32,8], index: 1, kind: input, shape index: {}]   ;;  %s724_s2 = inlined_call_operand.vmem [shape: f32[1,8], index: 2, kind: input, shape index: {}]   ;;  %s725_s3 = inlined_call_operand.vmem [shape: f32[8,32], index: 3, kind: input, shape index: {}]   ;;  %s726_s4 = inlined_call_operand.vmem [shape: f32[1,32], index: 4, kind: input, shape index: {}]   ;;  %s727_s5 = inlined_call_operand.hbm [shape: f32[2,32,64], index: 5, kind: output, shape index: {}]  }
   0x1   :  { %11 = vsyncpa [#allocation4], 0  ;;  %s550_s18 = smov [#allocation2]   ;;  %s502_s22 = scalar_lea.hbm %s722_s0, 1024 }
   0x2   :  { %s17_s19 = sshll.u32 %s550_s18, 4  ;;  %p503_p0 = scmp.ne.s32.totalorder %s722_s0, %s502_s22  ;;  %s18_s19 = int_to_ptr.vmem [resolvable:$true] %s17_s19 }
   0x3   :  { %p506_p1 = scmp.lt.u32.totalorder %s502_s22, %s722_s0 }
   0x5   :  { %p508_p2 = pnand %p506_p1, %p503_p0 }
   0x7   :  { %511 = shalt.err (!%p508_p2)
}
   0x8   :  { %s512_s27 = scalar_lea.vmem %s18_s19, 1024  ;;  %p517_p4 = scmp.lt.s32.totalorder %s18_s19, %s18_s19 }
   0x9   :  { %p513_p3 = scmp.ne.s32.totalorder %s18_s19, %s512_s27  ;;  %p518_p5 = scmp.lt.s32.totalorder %s512_s27, %s512_s27 }
   0xb   :  { %p519_p6 = por %p518_p5, %p517_p4 }
   0xd   :  { %p520_p7 = pnand %p519_p6, %p513_p3 }
   0xf   :  { %523 = shalt.err (!%p520_p7)
}
  0x10   :  { %s551_s28 = smov 128   ;;  %s552_s29 = smov 8  }
  0x11   :  { %23 = dma.hbm_to_vmem [thread:$0]  %s722_s0, 1024, %s18_s19, [#allocation3], %s551_s28, %s551_s28, %s552_s29  }
  0x12   :  { %546 = dma.done.wait [#allocation3], 1024  }
  0x13   :  { %547 = vsyncadd [#allocation3], 4294966272  ;;  %vm43_vm0 = vcmask 523264   ;;  %v602_v0 = vld [vmem:[#allocation2 + $0x20] sm:$0xff]  ;;  %v606_v2 = vld [vmem:[#allocation2 + $0x28] sm:$0xff]  ;;  %v553_v27 = vmov 0.0|0.0   ;;  %v108_v36 = vlaneseq }
  0x14   :  { %v604_v1 = vld [vmem:[#allocation2] sm:$0xff]  ;;  %v56_v3 = vsel %vm43_vm0, %v602_v0, 0.0  ;;  %v612_v5 = vld [vmem:[#allocation2 + $0x8] sm:$0xff]  ;;  %v59_v6 = vsel %vm43_vm0, %v606_v2, 0.0  ;;  %v618_v8 = vld [vmem:[#allocation2 + $0x30] sm:$0xff]  ;;  %v91_v18 = vsel %vm43_vm0, %v606_v2, -inf  ;;  %485 = vmatprep.subr.bf16.mxu0 %v553_v27 }
  0x15   :  { %v44_v4 = vsel %vm43_vm0, %v604_v1, 0.0  ;;  %57 = vadd.xlane.f32.xlu1 %v56_v3  ;;  %v47_v7 = vsel %vm43_vm0, %v612_v5, 0.0  ;;  %v620_v9 = vld [vmem:[#allocation2 + $0x10] sm:$0xff]  ;;  %v62_v10 = vsel %vm43_vm0, %v618_v8, 0.0  ;;  %v626_v12 = vld [vmem:[#allocation2 + $0x38] sm:$0xff]  ;;  %v79_v16 = vsel %vm43_vm0, %v612_v5, -inf }
  0x16   :  { %45 = vadd.xlane.f32.xlu0 %v44_v4  ;;  %v50_v11 = vsel %vm43_vm0, %v620_v9, 0.0  ;;  %v628_v13 = vld [vmem:[#allocation2 + $0x18] sm:$0xff]  ;;  %v65_v14 = vsel %vm43_vm0, %v626_v12, 0.0  ;;  %v76_v17 = vsel %vm43_vm0, %v604_v1, -inf  ;;  %v88_v19 = vsel %vm43_vm0, %v602_v0, -inf  ;;  %v208_v24 = vld [vmem:[%s723_s1] sm:$0xff] }
  0x17   :  { %v53_v15 = vsel %vm43_vm0, %v628_v13, 0.0  ;;  %v94_v20 = vsel %vm43_vm0, %v618_v8, -inf  ;;  %v82_v21 = vsel %vm43_vm0, %v620_v9, -inf  ;;  %v97_v22 = vsel %vm43_vm0, %v626_v12, -inf  ;;  %v209_v25 = vld [vmem:[%s723_s1 + $0x8] sm:$0xff]  ;;  %v210_v28 = vld [vmem:[%s723_s1 + $0x10] sm:$0xff] }
  0x18   :  { %v85_v23 = vsel %vm43_vm0, %v628_v13, -inf  ;;  %v486_v26 = vpack.c.bf16 %v209_v25, %v208_v24  ;;  %v211_v29 = vld [vmem:[%s723_s1 + $0x18] sm:$0xff]  ;;  %vm554_vm1 = vmmov 0   ;;  %v555_v31 = vmov 0.0  }
  0x19   :  { %60 = vadd.xlane.f32.xlu1 %v59_v6  ;;  %v489_v30 = vpack.c.bf16 %v211_v29, %v210_v28  ;;  %477 = vmatprep.mubr.msk.f32.mxu0 %vm554_vm1, %v555_v31  ;;  %v109_v39 = vand.u32 127, %v108_v36  ;;  %v662_v42 = vshrl.u32 %v108_v36, 7  ;;  %vm119_vm2 = vcmask 130112  }
  0x1a   :  { %48 = vadd.xlane.f32.xlu0 %v47_v7  ;;  %487 = vmatpush3.bf16.msra.mxu0 %v486_v26  ;;  %vm126_vm3 = vcmask 195712   ;;  %vm133_vm4 = vcmask 261312   ;;  %vm154_vm5 = vcmask 1041409   ;;  %vm203_vm6 = vcmask 1043459  }
  0x1b   :  { %488 = vmatprep.subr.bf16.mxu0 %v553_v27  ;;  %480 = vmatprep.subr.mxu1 %v555_v31  ;;  %v114_v43 = vadd.s32 4294967288, %v109_v39  ;;  %v121_v44 = vadd.s32 4294967280, %v109_v39  ;;  %v128_v45 = vadd.s32 4294967272, %v109_v39  ;;  %v112_v48 = vsub.s32 %v109_v39, %v662_v42 }
  0x1c   :  { %482 = vmatprep.mubr.msk.f32.mxu1 %vm554_vm1, %v555_v31  ;;  %vm206_vm7 = vcmask 1041408   ;;  %vm219_vm8 = vcmask 261120   ;;  %vm302_vm9 = vcmask 64512  }
  0x1d   :  { %63 = vadd.xlane.f32.xlu1 %v62_v10  ;;  %v117_v49 = vsub.s32 %v114_v43, %v662_v42  ;;  %v124_v52 = vsub.s32 %v121_v44, %v662_v42  ;;  %v131_v55 = vsub.s32 %v128_v45, %v662_v42  ;;  %v457_v43 = vld [vmem:[%s724_s2] ss:$0 sm:$0xff]  ;;  %s556_s2 = smov [#allocation5]  }
  0x1e   :  { %51 = vadd.xlane.f32.xlu0 %v50_v11  ;;  %490 = vmatpush3.bf16.msra.mxu0 %v489_v30 }
  0x21   :  { %66 = vadd.xlane.f32.xlu1 %v65_v14 }
  0x22   :  { %54 = vadd.xlane.f32.xlu0 %v53_v15 }
  0x25   :  { %80 = vmax.xlane.f32.xlu1 %v79_v16 }
  0x26   :  { %77 = vmax.xlane.f32.xlu0 %v76_v17 }
  0x29   :  { %92 = vmax.xlane.f32.xlu1 %v91_v18 }
  0x2a   :  { %89 = vmax.xlane.f32.xlu0 %v88_v19 }
  0x2d   :  { %95 = vmax.xlane.f32.xlu1 %v94_v20 }
  0x2e   :  { %83 = vmax.xlane.f32.xlu0 %v82_v21 }
  0x31   :  { %98 = vmax.xlane.f32.xlu1 %v97_v22 }
  0x32   :  { %86 = vmax.xlane.f32.xlu0 %v85_v23 }
  0xa2   :  { %v58_v32 = vpop.xlane.xlu1 %57 }
  0xa3   :  { %v46_v33 = vpop.xlane.xlu0 %45  ;;  %v72_v56 = vmul.f32 0.015625, %v58_v32 }
  0xa4   :  { %v68_v57 = vmul.f32 0.015625, %v46_v33 }
  0xa5   :  { %v138_v6 = vrot.slane %v72_v56, %v112_v48 }
  0xa6   :  { %v61_v34 = vpop.xlane.xlu1 %60  ;;  %v113_v7 = vrot.slane %v68_v57, %v112_v48  ;;  %v388_v57 = vsub.s32 0, %v662_v42 }
  0xa7   :  { %v49_v35 = vpop.xlane.xlu0 %48  ;;  %v73_v50 = vmul.f32 0.015625, %v61_v34 }
  0xa8   :  { %v69_v51 = vmul.f32 0.015625, %v49_v35 }
  0xa9   :  { %v142_v62 = vrot.slane %v73_v50, %v117_v49 }
  0xaa   :  { %v64_v37 = vpop.xlane.xlu1 %63  ;;  %v118_v63 = vrot.slane %v69_v51, %v117_v49 }
  0xab   :  { %v52_v38 = vpop.xlane.xlu0 %51  ;;  %v74_v53 = vmul.f32 0.015625, %v64_v37  ;;  %v143_v20 = vsel %vm119_vm2, %v142_v62, %v138_v6 }
  0xac   :  { %v70_v54 = vmul.f32 0.015625, %v52_v38  ;;  %v120_v21 = vsel %vm119_vm2, %v118_v63, %v113_v7 }
  0xad   :  { %v147_v3 = vrot.slane %v74_v53, %v124_v52 }
  0xae   :  { %v67_v40 = vpop.xlane.xlu1 %66  ;;  %v125_v4 = vrot.slane %v70_v54, %v124_v52 }
  0xaf   :  { %v55_v41 = vpop.xlane.xlu0 %54  ;;  %v75_v58 = vmul.f32 0.015625, %v67_v40  ;;  %v148_v24 = vsel %vm126_vm3, %v147_v3, %v143_v20 }
  0xb0   :  { %v71_v59 = vmul.f32 0.015625, %v55_v41  ;;  %v127_v25 = vsel %vm126_vm3, %v125_v4, %v120_v21  ;;  %v294_v41 = vld [vmem:[%s725_s3] sm:$0xff]  ;;  %s445_s3 = sshll.u32 %s556_s2, 4  ;;  %s446_s3 = int_to_ptr.vmem [resolvable:$true] %s445_s3 }
  0xb1   :  { %v152_v10 = vrot.slane %v75_v58, %v131_v55  ;;  %481 = vmatpush3.msra.mxu1 %v294_v41  ;;  %p529_p9 = scmp.lt.s32.totalorder %s446_s3, %s446_s3 }
  0xb2   :  { %v81_v46 = vpop.xlane.xlu1 %80  ;;  %v132_v11 = vrot.slane %v71_v59, %v131_v55 }
  0xb3   :  { %v78_v47 = vpop.xlane.xlu0 %77  ;;  %v172_v16 = vrot.slane %v81_v46, %v117_v49  ;;  %v153_v26 = vsel %vm133_vm4, %v152_v10, %v148_v24 }
  0xb4   :  { %v168_v17 = vrot.slane %v78_v47, %v112_v48  ;;  %v134_v27 = vsel %vm133_vm4, %v132_v11, %v127_v25 }
  0xb5   :  { %v155_v38 = vsel %vm154_vm5, %v153_v26, %v134_v27 }
  0xb6   :  { %v93_v60 = vpop.xlane.xlu1 %92  ;;  %v173_v30 = vsel %vm119_vm2, %v172_v16, %v168_v17 }
  0xb7   :  { %v90_v61 = vpop.xlane.xlu0 %89  ;;  %v191_v18 = vrot.slane %v93_v60, %v117_v49  ;;  %v407_v60 = vsub.s32 1, %v662_v42 }
  0xb8   :  { %v187_v19 = vrot.slane %v90_v61, %v112_v48  ;;  %v459_v48 = vld [vmem:[%s726_s4] ss:$0 sm:$0xff]  ;;  %s524_s4 = scalar_lea.vmem %s446_s3, 1024 }
  0xb9   :  { %p525_p8 = scmp.ne.s32.totalorder %s446_s3, %s524_s4  ;;  %p530_p10 = scmp.lt.s32.totalorder %s524_s4, %s524_s4 }
  0xba   :  { %v96_v14 = vpop.xlane.xlu1 %95  ;;  %v192_v31 = vsel %vm119_vm2, %v191_v18, %v187_v19 }
  0xbb   :  { %v84_v15 = vpop.xlane.xlu0 %83  ;;  %v196_v22 = vrot.slane %v96_v14, %v124_v52  ;;  %p531_p11 = por %p530_p10, %p529_p9 }
  0xbc   :  { %v177_v23 = vrot.slane %v84_v15, %v124_v52 }
  0xbd   :  { %v197_v34 = vsel %vm126_vm3, %v196_v22, %v192_v31  ;;  %p532_p12 = pnand %p531_p11, %p525_p8 }
  0xbe   :  { %v99_v28 = vpop.xlane.xlu1 %98  ;;  %v178_v35 = vsel %vm126_vm3, %v177_v23, %v173_v30 }
  0xbf   :  { %v87_v29 = vpop.xlane.xlu0 %86  ;;  %v201_v32 = vrot.slane %v99_v28, %v131_v55 }
  0xc0   :  { %v182_v33 = vrot.slane %v87_v29, %v131_v55 }
  0xc1   :  { %v202_v36 = vsel %vm133_vm4, %v201_v32, %v197_v34 }
  0xc2   :  { %v183_v37 = vsel %vm133_vm4, %v182_v33, %v178_v35 }
  0xc3   :  { %v204_v39 = vsel %vm203_vm6, %v202_v36, %v183_v37 }
  0xc4   :  { %v207_v40 = vsel %vm206_vm7, %v155_v38, %v204_v39 }
  0xc5   :  { %478 = vmatmul.mubr.msk.f32.vlgmr.msra.gmra.mrb[0].mxu0 %vm219_vm8, %v207_v40 }
 0x198   :  { %v289_v44 = vpop.f32.mrb[0].mxu0 }
 0x199   :  { %v290_v45 = vadd.f32 %v457_v43, %v289_v44  ;;  %v479_v46 = vpop.f32.mrb[1].mxu0 }
 0x19b   :  { %v293_v47 = vmax.f32 %v290_v45, 0.0 }
 0x19d   :  { %483 = vmatmul.mubr.msk.f32.vlgmr.msra.gmra.mrb[0].mxu1 %vm302_vm9, %v293_v47 }
 0x270   :  { %v372_v49 = vpop.f32.mrb[0].mxu1 }
 0x271   :  { %v373_v50 = vadd.f32 %v459_v48, %v372_v49  ;;  %v484_v51 = vpop.f32.mrb[1].mxu1 }
 0x273   :  { %v377_v52 = vrot.slane %v373_v50, 2 }
 0x275   :  { %v379_v53 = vadd.f32 %v377_v52, %v373_v50 }
 0x277   :  { %v461_v54 = vmul.f32 -1.442695, %v379_v53 }
 0x279   :  { %498 = vpow2.f32 %v461_v54 }
 0x283   :  { %v499_v55 = vpop.eup %498 }
 0x284   :  { %v383_v56 = vadd.f32 1.0, %v499_v55 }
 0x286   :  { %500 = vrcp.f32 %v383_v56 }
 0x290   :  { %v501_v58 = vpop.eup %500 }
 0x291   :  { %v389_v59 = vrot.slane %v501_v58, %v388_v57  ;;  %v408_v61 = vrot.slane %v501_v58, %v407_v60 }
 0x293   :  { %395 = vbcast.lane.b32.xlu1 %v389_v59, 264  ;;  %391 = vbcast.lane.b32.xlu0 %v389_v59, 256 }
 0x297   :  { %399 = vbcast.lane.b32.xlu1 %v389_v59, 272  ;;  %410 = vbcast.lane.b32.xlu0 %v408_v61, 256 }
 0x29b   :  { %403 = vbcast.lane.b32.xlu1 %v389_v59, 280  ;;  %418 = vbcast.lane.b32.xlu0 %v408_v61, 272 }
 0x29f   :  { %414 = vbcast.lane.b32.xlu1 %v408_v61, 264 }
 0x2a3   :  { %422 = vbcast.lane.b32.xlu1 %v408_v61, 280 }
 0x305   :  { %v396_v62 = vpop.permute.xlu1 %395  ;;  %v392_v63 = vpop.permute.xlu0 %391 }
 0x306   :  { %v425_v3 = vmul.f32 %v396_v62, %v612_v5  ;;  %v424_v4 = vmul.f32 %v392_v63, %v604_v1 }
 0x308   :  { %433 = vst.msk [vmem:[#allocation5 + $0x8] sm:$0xff] %vm43_vm0, %v425_v3  ;;  %432 = vst.msk [vmem:[#allocation5] sm:$0xff] %vm43_vm0, %v424_v4 }
 0x309   :  { %v400_v42 = vpop.permute.xlu1 %399  ;;  %v411_v6 = vpop.permute.xlu0 %410 }
 0x30a   :  { %v426_v7 = vmul.f32 %v400_v42, %v620_v9  ;;  %v428_v10 = vmul.f32 %v411_v6, %v602_v0 }
 0x30c   :  { %434 = vst.msk [vmem:[#allocation5 + $0x10] sm:$0xff] %vm43_vm0, %v426_v7  ;;  %436 = vst.msk [vmem:[#allocation5 + $0x20] sm:$0xff] %vm43_vm0, %v428_v10 }
 0x30d   :  { %v404_v11 = vpop.permute.xlu1 %403  ;;  %v419_v14 = vpop.permute.xlu0 %418 }
 0x30e   :  { %v427_v5 = vmul.f32 %v404_v11, %v628_v13  ;;  %v430_v1 = vmul.f32 %v419_v14, %v618_v8 }
 0x310   :  { %435 = vst.msk [vmem:[#allocation5 + $0x18] sm:$0xff] %vm43_vm0, %v427_v5  ;;  %438 = vst.msk [vmem:[#allocation5 + $0x30] sm:$0xff] %vm43_vm0, %v430_v1 }
 0x311   :  { %v415_v15 = vpop.permute.xlu1 %414 }
 0x312   :  { %v429_v16 = vmul.f32 %v415_v15, %v606_v2 }
 0x314   :  { %437 = vst.msk [vmem:[#allocation5 + $0x28] sm:$0xff] %vm43_vm0, %v429_v16 }
 0x315   :  { %v423_v0 = vpop.permute.xlu1 %422 }
 0x316   :  { %v431_v9 = vmul.f32 %v423_v0, %v626_v12 }
 0x318   :  { %439 = vst.msk [vmem:[#allocation5 + $0x38] sm:$0xff] %vm43_vm0, %v431_v9 }
 0x319   :  { %535 = shalt.err (!%p532_p12)
}
 0x31a   :  { %s536_s21 = scalar_lea.hbm %s727_s5, 1024 }
 0x31b   :  { %p537_p13 = scmp.ne.s32.totalorder %s727_s5, %s536_s21  ;;  %p540_p0 = scmp.lt.u32.totalorder %s536_s21, %s727_s5 }
 0x31d   :  { %p542_p1 = pnand %p540_p0, %p537_p13 }
 0x31f   :  { %545 = shalt.err (!%p542_p1)
}
 0x320   :  { %451 = dma.vmem_to_hbm [thread:$0]  %s446_s3, 1024, %s727_s5, [#allocation4], %s551_s28, %s551_s28, %s552_s29  }
 0x321   :  { %548 = dma.done.wait [#allocation4], 1024  }
 0x322   :  { %549 = vsyncadd [#allocation4], 4294966272 }
 0x323   :  { %455 = vsyncpa [#allocation3], 1 }
 0x324   :  { %456 = vsyncpa [#allocation4], 1 }

</bundles_post_ra>
